<compile_context>
chip_gen: v7x
topology: tpu7x:2x2x1
jax: 0.10.0
libtpu: 0.0.40
codegen_flags: <defaults>
</compile_context>

<pallas_src>
import functools
import math

import jax
import jax.numpy as jnp
from jax import lax
from jax.experimental import pallas as pl
from jax.experimental.pallas import tpu as pltpu

_LANE = 128
_SUBLANE = 8


def _round_up(n, m):
    return -(-n // m) * m


def _largest_divisor(n, candidates):
    for c in candidates:
        if c <= n and n % c == 0:
            return c
    return n


def _vmem_limit(estimate_bytes):
    """Explicit scoped-VMEM limit with headroom; stays under v7x 64 MiB."""
    return int(min(max(2 * estimate_bytes, 16 << 20), 48 << 20))


# ---------------------------------------------------------------------------
# Pass 1: fused, tiled QKV projection  qkv = x @ [Wq*scale | Wk | Wv]
# ---------------------------------------------------------------------------
def _qkv_proj_kernel(x_ref, w_ref, o_ref, acc_ref):
    @pl.when(pl.program_id(2) == 0)
    def _init():
        acc_ref[...] = jnp.zeros_like(acc_ref)

    acc_ref[...] += jnp.dot(x_ref[...], w_ref[...],
                            preferred_element_type=jnp.float32)

    @pl.when(pl.program_id(2) == pl.num_programs(2) - 1)
    def _store():
        o_ref[...] = acc_ref[...].astype(o_ref.dtype)


# ---------------------------------------------------------------------------
# Pass 2: flash-style causal attention over a flattened triangular grid
# ---------------------------------------------------------------------------
def _flash_attn_kernel(qi_ref, kj_ref, q_ref, k_ref, v_ref, o_ref,
                       m_sc, l_sc, acc_sc, *, blocks_per_q, approx_recip):
    c = pl.program_id(1)
    qi = qi_ref[c]                     # q-tile index (scalar, from SMEM table)
    kj = kj_ref[c]                     # kv-tile index (scalar, from SMEM table)
    tq = q_ref.shape[0]
    tk = k_ref.shape[0]

    @pl.when(kj == 0)
    def _init():
        m_sc[...] = jnp.full_like(m_sc, -jnp.inf)
        l_sc[...] = jnp.zeros_like(l_sc)
        acc_sc[...] = jnp.zeros_like(acc_sc)

    q = q_ref[...]                     # (tq, d_p), scale pre-folded into Wq
    k = k_ref[...]                     # (tk, d_p)
    # QK^T: contract the feature axis of both operands (no explicit k.T).
    s = lax.dot_general(q, k, (((1,), (1,)), ((), ())),
                        preferred_element_type=jnp.float32)     # (tq, tk)

    # Single accumulate path: the causal predicate is applied unconditionally;
    # on strictly-below-diagonal tiles the mask is all-false (cheap VPU filler
    # hidden under the MXU work).
    q_start = qi * tq
    k_start = kj * tk
    row = q_start + lax.broadcasted_iota(jnp.int32, (tq, tk), 0)
    col = k_start + lax.broadcasted_iota(jnp.int32, (tq, tk), 1)
    s = jnp.where(col > row, -jnp.inf, s)

    # Online softmax with lane-replicated (tq, 128) statistics.
    m_prev = m_sc[...]
    m_new = jnp.maximum(m_prev, jnp.max(s, axis=-1, keepdims=True))
    alpha = jnp.exp(m_prev - m_new)
    p = jnp.exp(s - m_new[:, :1])                                # (tq, tk)
    l_sc[...] = alpha * l_sc[...] + jnp.sum(p, axis=-1, keepdims=True)

    v = v_ref[...]                                               # (tk, d_p)
    pv = jnp.dot(p.astype(v.dtype), v, preferred_element_type=jnp.float32)
    acc_scale = alpha if acc_sc.shape[-1] == alpha.shape[-1] else alpha[:, :1]
    acc_sc[...] = acc_sc[...] * acc_scale + pv
    m_sc[...] = m_new

    # Last causally-needed kv tile for this q tile -> normalize & write out.
    @pl.when(kj == (qi + 1) * blocks_per_q - 1)
    def _finalize():
        inv_l = pl.reciprocal(l_sc[...], approx=approx_recip)
        out_scale = (inv_l if acc_sc.shape[-1] == inv_l.shape[-1]
                     else inv_l[:, :1])
        o_ref[...] = (acc_sc[...] * out_scale).astype(o_ref.dtype)


# ---------------------------------------------------------------------------
# Wrapper
# ---------------------------------------------------------------------------
def causal_attention(x, w_query, w_keys, w_value, *,
                     compute_dtype=jnp.bfloat16,
                     q_tile_target=512, kv_tile_target=256):
    """Forward of the PyTorch `CasualAttention` module (dropout p=0.0).

    x: (B, T, d_in); w_*: (d_in, d_out) in x @ W convention (transpose of
    torch.nn.Linear's weight). Returns (B, T, d_out) in x.dtype.
    """
    B, T, d_in = x.shape
    d_out = w_query.shape[1]

    # Lane-dense (multiple-of-128) feature dims; zero padding is exact math.
    d_in_p = _round_up(d_in, _LANE)
    d_p = _round_up(d_out, _LANE)
    n3 = 3 * d_p
    # Softmax scale uses the *true* key width, exactly as the PyTorch module.
    scale = 1.0 / math.sqrt(d_out)

    in_bytes = jnp.dtype(compute_dtype).itemsize
    out_bytes = jnp.dtype(x.dtype).itemsize

    # ---- sequence tiles: tq >= tk, tq a multiple of tk, capped by VMEM. ----
    base = _round_up(T, _SUBLANE)
    tk = min(kv_tile_target, base)
    tq = max(tk, (min(q_tile_target, base) // tk) * tk)

    def attn_vmem(tq_):
        return (2 * tq_ * d_p * in_bytes          # Q (double-buffered)
                + 4 * tk * d_p * in_bytes          # K, V (double-buffered)
                + 2 * tq_ * d_p * out_bytes        # O (double-buffered)
                + tq_ * d_p * 4                    # f32 accumulator
                + 2 * tq_ * _LANE * 4)             # m, l stats

    while tq > tk and attn_vmem(tq) > (24 << 20):
        tq = max(tk, (tq // 2 // tk) * tk)

    # Pad T so both tiles divide it; padded keys are causally masked for all
    # real queries and padded query rows are sliced off at the end.
    T_pad = _round_up(T, tq)
    n_q = T_pad // tq
    n_k = T_pad // tk
    M = B * T_pad

    # ---- padded / flattened inputs, scale folded into Wq. ----
    xp = jnp.pad(x, ((0, 0), (0, T_pad - T), (0, d_in_p - d_in)))
    xp = xp.astype(compute_dtype).reshape(M, d_in_p)

    def _pad_w(w):
        return jnp.pad(w, ((0, d_in_p - d_in), (0, d_p - d_out)))

    w_qkv = jnp.concatenate(
        [_pad_w(w_query * scale), _pad_w(w_keys), _pad_w(w_value)], axis=1
    ).astype(compute_dtype)                             # (d_in_p, 3*d_p)

    # ---- Pass 1: tiled fused QKV projection. ----
    tm = _largest_divisor(M, (512, 256, 128, 64, 32, 16, 8))
    tkk = _largest_divisor(d_in_p, (512, 256, 128))
    tn = _largest_divisor(n3, (512, 384, 256, 128))

    p1_vmem = (2 * tm * tkk * in_bytes + 2 * tkk * tn * in_bytes
               + 2 * tm * tn * in_bytes + tm * tn * 4)

    qkv = pl.pallas_call(
        _qkv_proj_kernel,
        out_shape=jax.ShapeDtypeStruct((M, n3), compute_dtype),
        grid_spec=pltpu.PrefetchScalarGridSpec(
            num_scalar_prefetch=0,
            grid=(M // tm, n3 // tn, d_in_p // tkk),
            in_specs=[
                pl.BlockSpec((tm, tkk), lambda i, j, kk: (i, kk)),
                pl.BlockSpec((tkk, tn), lambda i, j, kk: (kk, j)),
            ],
            out_specs=pl.BlockSpec((tm, tn), lambda i, j, kk: (i, j)),
            scratch_shapes=[pltpu.VMEM((tm, tn), jnp.float32)],
        ),
        compiler_params=pltpu.CompilerParams(
            dimension_semantics=("parallel", "parallel", "arbitrary"),
            vmem_limit_bytes=_vmem_limit(p1_vmem)),
    )(xp, w_qkv)

    # ---- Pass 2: flattened lower-triangular grid over (qi, kj) cells. ----
    blocks_per_q = tq // tk
    qi_list, kj_list = [], []
    for qi in range(n_q):
        for kj in range((qi + 1) * blocks_per_q):   # only causally-needed kj
            qi_list.append(qi)
            kj_list.append(kj)
    qi_tbl = jnp.asarray(qi_list, dtype=jnp.int32)
    kj_tbl = jnp.asarray(kj_list, dtype=jnp.int32)
    n_cells = len(qi_list)

    kernel = functools.partial(
        _flash_attn_kernel,
        blocks_per_q=blocks_per_q,
        approx_recip=(compute_dtype != jnp.float32))

    # Q / K / V are the three d_p-wide column blocks of the fused qkv array.
    q_idx = lambda b, c, qi_t, kj_t: (b * n_q + qi_t[c], 0)
    k_idx = lambda b, c, qi_t, kj_t: (b * n_k + kj_t[c], 1)
    v_idx = lambda b, c, qi_t, kj_t: (b * n_k + kj_t[c], 2)

    out2d = pl.pallas_call(
        kernel,
        out_shape=jax.ShapeDtypeStruct((M, d_p), x.dtype),
        grid_spec=pltpu.PrefetchScalarGridSpec(
            num_scalar_prefetch=2,
            grid=(B, n_cells),
            in_specs=[
                pl.BlockSpec((tq, d_p), q_idx),
                pl.BlockSpec((tk, d_p), k_idx),
                pl.BlockSpec((tk, d_p), v_idx),
            ],
            out_specs=pl.BlockSpec((tq, d_p), q_idx),
            scratch_shapes=[
                pltpu.VMEM((tq, _LANE), jnp.float32),   # running max m
                pltpu.VMEM((tq, _LANE), jnp.float32),   # running denom l
                pltpu.VMEM((tq, d_p), jnp.float32),     # f32 accumulator
            ],
        ),
        compiler_params=pltpu.CompilerParams(
            dimension_semantics=("parallel", "arbitrary"),
            vmem_limit_bytes=_vmem_limit(attn_vmem(tq))),
    )(qi_tbl, kj_tbl, qkv, qkv, qkv)

    # TODO(synk): the unpad slice is an extra XLA copy; fuse into the consumer
    # (or keep heads packed to a multiple of 128) in a real multi-head model.
    return out2d.reshape(B, T_pad, d_p)[:, :T, :d_out]


def reference_causal_attention(x, w_query, w_keys, w_value):
    """Pure-JAX f32 reference mirroring the PyTorch forward."""
    q = x @ w_query
    k = x @ w_keys
    v = x @ w_value
    scores = jnp.einsum("btd,bsd->bts", q, k)
    T = x.shape[1]
    mask = jnp.triu(jnp.ones((T, T), dtype=bool), k=1)
    scores = jnp.where(mask[None, :, :], -jnp.inf, scores)
    weights = jax.nn.softmax(scores / math.sqrt(k.shape[-1]), axis=-1)
    return weights @ v


if __name__ == "__main__":
    # Small shapes consistent with the module: batch=2, seq(num_tokens)=8,
    # d_in=32, d_out=32, context_length=8, dropout=0.0, qkv_bias=False.
    B, T, d_in, d_out = 2, 8, 32, 32

    key = jax.random.PRNGKey(0)
    kx, kq, kk, kv = jax.random.split(key, 4)
    x = jax.random.normal(kx, (B, T, d_in), dtype=jnp.float32)
    init = 1.0 / math.sqrt(d_in)
    w_query = jax.random.uniform(kq, (d_in, d_out), jnp.float32, -init, init)
    w_keys = jax.random.uniform(kk, (d_in, d_out), jnp.float32, -init, init)
    w_value = jax.random.uniform(kv, (d_in, d_out), jnp.float32, -init, init)

    ref = reference_causal_attention(x, w_query, w_keys, w_value)

    # Default path: bf16 matmul operands, f32 accumulation / softmax stats.
    out_bf16 = jax.block_until_ready(
        causal_attention(x, w_query, w_keys, w_value))
    assert out_bf16.shape == (B, T, d_out) and out_bf16.dtype == x.dtype
    assert jnp.allclose(out_bf16, ref, atol=5e-2, rtol=5e-2), \
        "bf16-compute kernel mismatch vs reference"

    # Full f32 compute path (exact reciprocal), tight tolerance.
    out_f32 = jax.block_until_ready(
        causal_attention(x, w_query, w_keys, w_value,
                         compute_dtype=jnp.float32))
    assert jnp.allclose(out_f32, ref, atol=2e-3, rtol=2e-3), \
        "f32-compute kernel mismatch vs reference"

    # Multi-tile smoke test: non-divisible T (padding), tq != tk, triangular
    # flattened grid, and a tiled d_in reduction in Pass 1.
    B2, T2, d_in2, d_out2 = 1, 40, 300, 96
    k2 = jax.random.split(jax.random.PRNGKey(0), 4)
    x2 = jax.random.normal(k2[0], (B2, T2, d_in2), dtype=jnp.float32)
    init2 = 1.0 / math.sqrt(d_in2)
    wq2 = jax.random.uniform(k2[1], (d_in2, d_out2), jnp.float32, -init2, init2)
    wk2 = jax.random.uniform(k2[2], (d_in2, d_out2), jnp.float32, -init2, init2)
    wv2 = jax.random.uniform(k2[3], (d_in2, d_out2), jnp.float32, -init2, init2)
    ref2 = reference_causal_attention(x2, wq2, wk2, wv2)
    out2 = jax.block_until_ready(
        causal_attention(x2, wq2, wk2, wv2, compute_dtype=jnp.float32,
                         q_tile_target=16, kv_tile_target=8))
    assert out2.shape == (B2, T2, d_out2)
    assert jnp.allclose(out2, ref2, atol=2e-3, rtol=2e-3), \
        "multi-tile kernel mismatch vs reference"

    print("KERNEL_OK")
</pallas_src>

<mosaic_0001>
module attributes {stable_mosaic.version = 11 : i64} {
  func.func @_qkv_proj_kernel(%arg0: i32, %arg1: i32, %arg2: i32, %arg3: memref<16x128xbf16, #tpu.memory_space<vmem>>, %arg4: memref<128x384xbf16, #tpu.memory_space<vmem>>, %arg5: memref<16x384xbf16, #tpu.memory_space<vmem>>, %arg6: memref<16x384xf32, #tpu.memory_space<vmem>>) attributes {dimension_semantics = [#tpu.dimension_semantics<parallel>, #tpu.dimension_semantics<parallel>, #tpu.dimension_semantics<arbitrary>], iteration_bounds = array<i64: 1, 1, 1>, scalar_prefetch = 0 : i64, scratch_operands = 1 : i64, tpu.core_type = #tpu.core_type<tc>, window_params = [{transform_indices = @transform_0, window_bounds = array<i64: 16, 128>}, {transform_indices = @transform_1, window_bounds = array<i64: 128, 384>}, {transform_indices = @transform_2, window_bounds = array<i64: 16, 384>}]} {
    %c0_i32 = arith.constant 0 : i32
    %0 = arith.cmpi eq, %arg2, %c0_i32 : i32
    %1 = arith.extui %0 : i1 to i32
    %c0_i32_0 = arith.constant 0 : i32
    %2 = arith.cmpi ne, %1, %c0_i32_0 : i32
    scf.if %2 {
      %cst_10 = arith.constant 0.000000e+00 : f32
      %12 = vector.broadcast %cst_10 : f32 to vector<16x384xf32>
      %c0_11 = arith.constant 0 : index
      %c0_12 = arith.constant 0 : index
      %13 = vector.load %arg6[%c0_11, %c0_12] : memref<16x384xf32, #tpu.memory_space<vmem>>, vector<16x384xf32>
      tpu.vector_store %arg6[%c0_11, %c0_12], %12 {strides = array<i32>} : memref<16x384xf32, #tpu.memory_space<vmem>>, vector<16x384xf32>,
    } else {
    }
    %c0 = arith.constant 0 : index
    %c0_1 = arith.constant 0 : index
    %3 = vector.load %arg6[%c0, %c0_1] : memref<16x384xf32, #tpu.memory_space<vmem>>, vector<16x384xf32>
    %c0_2 = arith.constant 0 : index
    %c0_3 = arith.constant 0 : index
    %4 = vector.load %arg3[%c0_2, %c0_3] : memref<16x128xbf16, #tpu.memory_space<vmem>>, vector<16x128xbf16>
    %c0_4 = arith.constant 0 : index
    %c0_5 = arith.constant 0 : index
    %5 = vector.load %arg4[%c0_4, %c0_5] : memref<128x384xbf16, #tpu.memory_space<vmem>>, vector<128x384xbf16>
    %cst = arith.constant dense<0.000000e+00> : vector<16x384xf32>
    %6 = tpu.matmul %4, %5, %cst {dimension_numbers = #tpu.dot_dimension_numbers<[1], [0], [0], [1], [0, 0, 1, 1], [], []>} : vector<16x128xbf16>, vector<128x384xbf16>, vector<16x384xf32> -> vector<16x384xf32>
    %7 = arith.addf %3, %6 : vector<16x384xf32>
    %c0_6 = arith.constant 0 : index
    %c0_7 = arith.constant 0 : index
    %8 = vector.load %arg6[%c0_6, %c0_7] : memref<16x384xf32, #tpu.memory_space<vmem>>, vector<16x384xf32>
    tpu.vector_store %arg6[%c0_6, %c0_7], %7 {strides = array<i32>} : memref<16x384xf32, #tpu.memory_space<vmem>>, vector<16x384xf32>,
    %c0_i32_8 = arith.constant 0 : i32
    %9 = arith.cmpi eq, %arg2, %c0_i32_8 : i32
    %10 = arith.extui %9 : i1 to i32
    %c0_i32_9 = arith.constant 0 : i32
    %11 = arith.cmpi ne, %10, %c0_i32_9 : i32
    scf.if %11 {
      %c0_10 = arith.constant 0 : index
      %c0_11 = arith.constant 0 : index
      %12 = vector.load %arg6[%c0_10, %c0_11] : memref<16x384xf32, #tpu.memory_space<vmem>>, vector<16x384xf32>
      %13 = arith.truncf %12 : vector<16x384xf32> to vector<16x384xbf16>
      %c0_12 = arith.constant 0 : index
      %c0_13 = arith.constant 0 : index
      %14 = vector.load %arg5[%c0_12, %c0_13] : memref<16x384xbf16, #tpu.memory_space<vmem>>, vector<16x384xbf16>
      tpu.vector_store %arg5[%c0_12, %c0_13], %13 {strides = array<i32>} : memref<16x384xbf16, #tpu.memory_space<vmem>>, vector<16x384xbf16>,
    } else {
    }
    return
  }
  func.func @transform_0(%arg0: i32, %arg1: i32, %arg2: i32) -> (i32, i32) {
    %c0_i32 = arith.constant 0 : i32
    return %arg0, %arg2 : i32, i32
  }
  func.func @transform_1(%arg0: i32, %arg1: i32, %arg2: i32) -> (i32, i32) {
    %c0_i32 = arith.constant 0 : i32
    return %arg2, %arg1 : i32, i32
  }
  func.func @transform_2(%arg0: i32, %arg1: i32, %arg2: i32) -> (i32, i32) {
    %c0_i32 = arith.constant 0 : i32
    return %arg0, %arg1 : i32, i32
  }
}

</mosaic_0001>

<bundles_post_ra>
// kernel: tpu_custom_call.1
= control target key start
LH: loop header
LB: loop body
LE: loop exit
PB: predicated region body
PF: predicated region fallthrough
CT: control target
= control target key end

     0   :  { %7 = vsyncpa [#allocation4], 0  ;;  %s616_s0 = inlined_call_operand.hbm [shape: bf16[16,128], index: 0, kind: input, shape index: {}]   ;;  %s617_s1 = inlined_call_operand.hbm [shape: bf16[128,384], index: 1, kind: input, shape index: {}]   ;;  %s618_s2 = inlined_call_operand.hbm [shape: bf16[16,384], index: 2, kind: output, shape index: {}]  }
   0x1   :  { %8 = vsyncpa [#allocation7], 0 }
   0x2   :  { %9 = vsyncpa [#allocation5], 0  ;;  %s549_s9 = smov [#allocation3]   ;;  %s477_s13 = scalar_lea.hbm %s616_s0, 128 }
   0x3   :  { %s15_s10 = sshll.u32 %s549_s9, 4  ;;  %p478_p0 = scmp.ne.s32.totalorder %s616_s0, %s477_s13  ;;  %s16_s10 = int_to_ptr.vmem [resolvable:$true] %s15_s10 }
   0x4   :  { %p481_p1 = scmp.lt.u32.totalorder %s477_s13, %s616_s0 }
   0x6   :  { %p483_p2 = pnand %p481_p1, %p478_p0 }
   0x8   :  { %486 = shalt.err (!%p483_p2)
}
   0x9   :  { %s487_s18 = scalar_lea.vmem %s16_s10, 128  ;;  %p492_p4 = scmp.lt.s32.totalorder %s16_s10, %s16_s10 }
   0xa   :  { %p488_p3 = scmp.ne.s32.totalorder %s16_s10, %s487_s18  ;;  %p493_p5 = scmp.lt.s32.totalorder %s487_s18, %s487_s18 }
   0xc   :  { %p494_p6 = por %p493_p5, %p492_p4 }
   0xe   :  { %p495_p7 = pnand %p494_p6, %p488_p3 }
  0x10   :  { %498 = shalt.err (!%p495_p7)
}
  0x11   :  { %s550_s19 = smov 64   ;;  %s551_s20 = smov 4  }
  0x12   :  { %21 = dma.hbm_to_vmem [thread:$0]  %s616_s0, 128, %s16_s10, [#allocation4], %s550_s19, %s550_s19, %s551_s20  }
  0x13   :  { %s552_s23 = smov [#allocation6]   ;;  %s499_s27 = scalar_lea.hbm %s617_s1, 3072 }
  0x14   :  { %s27_s24 = sshll.u32 %s552_s23, 4  ;;  %p500_p8 = scmp.ne.s32.totalorder %s617_s1, %s499_s27  ;;  %s28_s24 = int_to_ptr.vmem [resolvable:$true] %s27_s24 }
  0x15   :  { %p503_p9 = scmp.lt.u32.totalorder %s499_s27, %s617_s1 }
  0x17   :  { %p505_p10 = pnand %p503_p9, %p500_p8 }
  0x19   :  { %508 = shalt.err (!%p505_p10)
}
  0x1a   :  { %s509_s4 = scalar_lea.vmem %s28_s24, 3072  ;;  %p514_p12 = scmp.lt.s32.totalorder %s28_s24, %s28_s24 }
  0x1b   :  { %p510_p11 = scmp.ne.s32.totalorder %s28_s24, %s509_s4  ;;  %p515_p13 = scmp.lt.s32.totalorder %s509_s4, %s509_s4 }
  0x1d   :  { %p516_p0 = por %p515_p13, %p514_p12 }
  0x1f   :  { %p517_p1 = pnand %p516_p0, %p510_p11 }
  0x21   :  { %520 = shalt.err (!%p517_p1)
}
  0x22   :  { %s553_s0 = smov 192   ;;  %s554_s5 = smov 12  }
  0x23   :  { %33 = dma.hbm_to_vmem [thread:$0]  %s617_s1, 3072, %s28_s24, [#allocation7], %s553_s0, %s553_s0, %s554_s5  }
  0x24   :  { %543 = dma.done.wait [#allocation4], 128  }
  0x25   :  { %544 = vsyncadd [#allocation4], 4294967168 }
  0x26   :  { %545 = dma.done.wait [#allocation7], 3072  }
  0x27   :  { %546 = vsyncadd [#allocation7], 4294964224  ;;  %v555_v0 = vmov 0.0   ;;  %vm556_vm0 = vmmov 0   ;;  %v557_v1 = vmov 0   ;;  %v476_v26 = vld [vmem:[#allocation3] sm:$0xff]  }
  0x28   :  { %414 = vmatprep.subr.bf16.mxu1 %v555_v0  ;;  %430 = vmatprep.mubr.msk.bf16.mxu1 %vm556_vm0, %v555_v0  ;;  %v444_v2 = vld [vmem:[#allocation6 + $0x4] ss:$12 sps:$4 sm:$0xff]   ;;  %v446_v3 = vld [vmem:[#allocation6 + $0x8] ss:$12 sps:$4 sm:$0xff]   ;;  %v447_v4 = vld [vmem:[#allocation6] ss:$12 sps:$4 sm:$0xff]  }
  0x29   :  { %257 = vmatprep.mubr.bf16.mxu0 %v557_v1  ;;  %225 = vmatprep.subr.bf16.mxu0 %v444_v2  ;;  %v448_v5 = vld [vmem:[#allocation6 + $0x1c] ss:$12 sps:$4 sm:$0xff]   ;;  %v450_v6 = vld [vmem:[#allocation6 + $0x20] ss:$12 sps:$4 sm:$0xff]   ;;  %v451_v7 = vld [vmem:[#allocation6 + $0x18] ss:$12 sps:$4 sm:$0xff]  }
  0x2a   :  { %415 = vmatpush3.bf16.msra.mxu1 %v446_v3  ;;  %226 = vmatpush1.bf16.msra.mxu0 %v447_v4  ;;  %v452_v8 = vld [vmem:[#allocation6 + $0x34] ss:$12 sps:$4 sm:$0xff]   ;;  %v454_v9 = vld [vmem:[#allocation6 + $0x38] ss:$12 sps:$4 sm:$0xff]   ;;  %v455_v10 = vld [vmem:[#allocation6 + $0x30] ss:$12 sps:$4 sm:$0xff]  }
  0x2b   :  { %416 = vmatprep.subr.bf16.mxu1 %v555_v0  ;;  %227 = vmatprep.subr.bf16.mxu0 %v448_v5  ;;  %v456_v11 = vld [vmem:[#allocation6 + $0x4c] ss:$12 sps:$4 sm:$0xff]   ;;  %v458_v12 = vld [vmem:[#allocation6 + $0x50] ss:$12 sps:$4 sm:$0xff]   ;;  %v459_v13 = vld [vmem:[#allocation6 + $0x48] ss:$12 sps:$4 sm:$0xff]  }
  0x2c   :  { %v460_v14 = vld [vmem:[#allocation6 + $0x64] ss:$12 sps:$4 sm:$0xff]   ;;  %v462_v15 = vld [vmem:[#allocation6 + $0x68] ss:$12 sps:$4 sm:$0xff]   ;;  %v463_v16 = vld [vmem:[#allocation6 + $0x60] ss:$12 sps:$4 sm:$0xff]  }
  0x2d   :  { %v464_v17 = vld [vmem:[#allocation6 + $0x7c] ss:$12 sps:$4 sm:$0xff]   ;;  %v466_v18 = vld [vmem:[#allocation6 + $0x80] ss:$12 sps:$4 sm:$0xff]   ;;  %v467_v19 = vld [vmem:[#allocation6 + $0x78] ss:$12 sps:$4 sm:$0xff]  }
  0x2e   :  { %417 = vmatpush3.bf16.msra.mxu1 %v450_v6  ;;  %228 = vmatpush1.bf16.msra.mxu0 %v451_v7  ;;  %v468_v20 = vld [vmem:[#allocation6 + $0x94] ss:$12 sps:$4 sm:$0xff]   ;;  %v470_v21 = vld [vmem:[#allocation6 + $0x98] ss:$12 sps:$4 sm:$0xff]   ;;  %v471_v22 = vld [vmem:[#allocation6 + $0x90] ss:$12 sps:$4 sm:$0xff]  }
  0x2f   :  { %418 = vmatprep.subr.bf16.mxu1 %v555_v0  ;;  %229 = vmatprep.subr.bf16.mxu0 %v452_v8  ;;  %v472_v23 = vld [vmem:[#allocation6 + $0xac] ss:$12 sps:$4 sm:$0xff]   ;;  %v474_v24 = vld [vmem:[#allocation6 + $0xb0] ss:$12 sps:$4 sm:$0xff]   ;;  %v475_v25 = vld [vmem:[#allocation6 + $0xa8] ss:$12 sps:$4 sm:$0xff]  }
  0x30   :  { %s558_s1 = smov [#allocation8]  }
  0x31   :  { %s359_s8 = sshll.u32 %s558_s1, 4  ;;  %s360_s8 = int_to_ptr.vmem [resolvable:$true] %s359_s8 }
  0x32   :  { %419 = vmatpush3.bf16.msra.mxu1 %v454_v9  ;;  %230 = vmatpush1.bf16.msra.mxu0 %v455_v10  ;;  %s521_s9 = scalar_lea.vmem %s360_s8, 384  ;;  %p526_p3 = scmp.lt.s32.totalorder %s360_s8, %s360_s8 }
  0x33   :  { %420 = vmatprep.subr.bf16.mxu1 %v555_v0  ;;  %231 = vmatprep.subr.bf16.mxu0 %v456_v11  ;;  %p522_p2 = scmp.ne.s32.totalorder %s360_s8, %s521_s9  ;;  %p527_p4 = scmp.lt.s32.totalorder %s521_s9, %s521_s9 }
  0x35   :  { %p528_p5 = por %p527_p4, %p526_p3 }
  0x36   :  { %421 = vmatpush3.bf16.msra.mxu1 %v458_v12  ;;  %232 = vmatpush1.bf16.msra.mxu0 %v459_v13 }
  0x37   :  { %422 = vmatprep.subr.bf16.mxu1 %v555_v0  ;;  %233 = vmatprep.subr.bf16.mxu0 %v460_v14  ;;  %p529_p6 = pnand %p528_p5, %p522_p2 }
  0x3a   :  { %423 = vmatpush3.bf16.msra.mxu1 %v462_v15  ;;  %234 = vmatpush1.bf16.msra.mxu0 %v463_v16 }
  0x3b   :  { %424 = vmatprep.subr.bf16.mxu1 %v555_v0  ;;  %235 = vmatprep.subr.bf16.mxu0 %v464_v17 }
  0x3e   :  { %425 = vmatpush3.bf16.msra.mxu1 %v466_v18  ;;  %236 = vmatpush1.bf16.msra.mxu0 %v467_v19 }
  0x3f   :  { %426 = vmatprep.subr.bf16.mxu1 %v555_v0  ;;  %237 = vmatprep.subr.bf16.mxu0 %v468_v20 }
  0x42   :  { %427 = vmatpush3.bf16.msra.mxu1 %v470_v21  ;;  %238 = vmatpush1.bf16.msra.mxu0 %v471_v22 }
  0x43   :  { %428 = vmatprep.subr.bf16.mxu1 %v555_v0  ;;  %239 = vmatprep.subr.bf16.mxu0 %v472_v23 }
  0x46   :  { %429 = vmatpush3.bf16.msra.mxu1 %v474_v24  ;;  %240 = vmatpush1.bf16.msra.mxu0 %v475_v25 }
  0x49   :  { %431 = vmatmul.mubr.bf16.vlgmr.msra.gmra.mrb[0].mxu1 %v476_v26  ;;  %258 = vmatmul.mubr.bf16.vlgmr.msra.gmra.mrb[0].mxu0 %v476_v26 }
 0x11c   :  { %v302_v27 = vpop.f32.mrb[0].mxu1  ;;  %v259_v29 = vpop.f32.mrb[0].mxu0 }
 0x11d   :  { %v402_v28 = vpack.c.bf16 %v302_v27, %v302_v27  ;;  %v432_v30 = vpop.f32.mrb[1].mxu1  ;;  %v261_v31 = vpop.f32.mrb[1].mxu0 }
 0x11e   :  { %v305_v32 = vpop.f32.mrb[2].mxu1  ;;  %v401_v33 = vpack.c.bf16 %v261_v31, %v259_v29  ;;  %v263_v35 = vpop.f32.mrb[2].mxu0 }
 0x11f   :  { %351 = vst [vmem:[#allocation8 + $0x8] sm:$0xf] %v402_v28  ;;  %v404_v34 = vpack.c.bf16 %v305_v32, %v305_v32  ;;  %v433_v36 = vpop.f32.mrb[3].mxu1  ;;  %v265_v37 = vpop.f32.mrb[3].mxu0 }
 0x120   :  { %350 = vst [vmem:[#allocation8] sm:$0xff] %v401_v33  ;;  %v403_v38 = vpack.c.bf16 %v265_v37, %v263_v35 }
 0x121   :  { %353 = vst [vmem:[#allocation8 + $0x14] sm:$0xf] %v404_v34 }
 0x122   :  { %352 = vst [vmem:[#allocation8 + $0xc] sm:$0xff] %v403_v38 }
 0x123   :  { %532 = shalt.err (!%p529_p6)
}
 0x124   :  { %s533_s12 = scalar_lea.hbm %s618_s2, 384 }
 0x125   :  { %p534_p7 = scmp.ne.s32.totalorder %s618_s2, %s533_s12  ;;  %p537_p8 = scmp.lt.u32.totalorder %s533_s12, %s618_s2 }
 0x127   :  { %p539_p9 = pnand %p537_p8, %p534_p7 }
 0x129   :  { %542 = shalt.err (!%p539_p9)
}
 0x12a   :  { %365 = dma.vmem_to_hbm [thread:$0]  %s360_s8, 384, %s618_s2, [#allocation5], %s553_s0, %s553_s0, %s554_s5  }
 0x12b   :  { %547 = dma.done.wait [#allocation5], 384  }
 0x12c   :  { %548 = vsyncadd [#allocation5], 4294966912 }
 0x12d   :  { %369 = vsyncpa [#allocation4], 1 }
 0x12e   :  { %370 = vsyncpa [#allocation7], 1 }
 0x12f   :  { %371 = vsyncpa [#allocation5], 1 }

</bundles_post_ra>
